<compile_context>
chip_gen: v7x
topology: tpu7x:2x2x1
jax: 0.10.0
libtpu: 0.0.40
codegen_flags: <defaults>
</compile_context>

<pallas_src>
import functools

import jax
import jax.numpy as jnp
from jax.experimental import pallas as pl
from jax.experimental.pallas import tpu as pltpu

BN_EPS = 1e-5


def _ceil_to(x, m):
    return (x + m - 1) // m * m


def _pvec_layout(hidden_dim, num_domains):
    """Lane-aligned (multiple-of-128) offsets of every small parameter row inside
    the packed [1, P] parameter vector.
    Order: b1, g1, be1, b2, g2, be2, bc, mi_b1, mi_w2_row, mi_b2."""
    H, D = hidden_dim, num_domains
    H2 = 2 * H
    sizes = (H2, H2, H2, H, H, H, D, H, H, 1)
    offs, off = [], 0
    for n in sizes:
        offs.append(off)
        off += _ceil_to(n, 128)
    return tuple(offs), off


def pack_params(params, matmul_dtype=jnp.bfloat16):
    """One-time packing of the module parameters into MXU/DMA-friendly slabs.

    Hoisted out of the per-step path: run once, keep the returned arrays on device.
    matmul_dtype=bf16 by default (valid on v5e as well as v6e/v7x): MXU-native
    operands and half the weight DMA bytes; BN/elementwise math stays f32 in-kernel.
    """
    H2, H = params["w2_t"].shape
    D = params["wc_t"].shape[1]
    Hpad = _ceil_to(H, 128)     # lane-padded hidden width (dd / MI projection)
    Cpad = _ceil_to(D, 128)     # lane-padded classifier width
    Hr = _ceil_to(H, 16)        # sublane-aligned row offset of the dd weight block

    # W1 : (F, 2H), as-is.
    w1 = params["w1_t"].astype(matmul_dtype)

    # W2 : (2H, H) column-padded to Hpad so dd is computed (and stored) lane-dense.
    # Padded columns stay exactly 0 because b2/g2/be2 are zero-padded in pvec.
    w2 = jnp.zeros((H2, Hpad), matmul_dtype)
    w2 = w2.at[:, :H].set(params["w2_t"].astype(matmul_dtype))

    # Column-packed classifier + MI-projection weights (one slab, two row blocks):
    #   rows [0 : H]        -> [ wc_t | mi_w1a_t ]   (applied to di_features)
    #   rows [Hr : Hr+Hpad] -> [ wc_t | mi_w1b_t ]   (applied to padded dd_features)
    W = Cpad + Hpad
    wproj = jnp.zeros((Hr + Hpad, W), matmul_dtype)
    wproj = wproj.at[:H, :D].set(params["wc_t"].astype(matmul_dtype))
    wproj = wproj.at[:H, Cpad:Cpad + H].set(params["mi_w1a_t"].astype(matmul_dtype))
    wproj = wproj.at[Hr:Hr + H, :D].set(params["wc_t"].astype(matmul_dtype))
    wproj = wproj.at[Hr:Hr + H, Cpad:Cpad + H].set(params["mi_w1b_t"].astype(matmul_dtype))

    # All per-feature rows (biases, BN gamma/beta, MI head) in one [1, P] f32 row;
    # every segment starts on a 128-lane boundary and is zero-padded.
    rows = (params["b1"], params["g1"], params["be1"],
            params["b2"], params["g2"], params["be2"],
            params["bc"], params["mi_b1"], params["mi_w2_row"], params["mi_b2"])
    offs, total = _pvec_layout(H, D)
    pvec = jnp.zeros((1, total), jnp.float32)
    for off, r in zip(offs, rows):
        r = jnp.reshape(r, (-1,)).astype(jnp.float32)
        pvec = pvec.at[0, off:off + r.shape[0]].set(r)

    return {"w1": w1, "w2": w2, "wproj": wproj, "pvec": pvec}


@functools.partial(jax.jit, static_argnames=("num_domains",))
def ddn_forward(features, di_features, packed, num_domains):
    B, _ = features.shape
    H = di_features.shape[1]
    H2 = 2 * H
    D = num_domains
    Hpad = _ceil_to(H, 128)
    Cpad = _ceil_to(D, 128)
    Hr = _ceil_to(H, 16)
    (O_B1, O_G1, O_BE1, O_B2, O_G2, O_BE2,
     O_BC, O_MIB1, O_MIW2, O_MIB2), _ = _pvec_layout(H, D)
    inv_b = 1.0 / B

    def kernel(feat_ref, di_ref, w1_ref, w2_ref, wproj_ref, pvec_ref,
               dd_ref, cls_ref, mi_ref):
        def mm(a, w):
            # weights pre-cast in pack_params; only the activation cast is in-kernel
            return jnp.dot(a.astype(w.dtype), w, preferred_element_type=jnp.float32)

        def bn_relu(h, g, be):
            # one-pass training-mode BatchNorm1d (biased var), variance clamped >= 0
            s = jnp.sum(h, axis=0, keepdims=True)
            q = jnp.sum(h * h, axis=0, keepdims=True)
            m = s * inv_b
            v = jnp.maximum(q * inv_b - m * m, 0.0)
            return jnp.maximum((h - m) * jax.lax.rsqrt(v + BN_EPS) * g + be, 0.0)

        x = feat_ref[...]                                   # (B, F) f32
        di = di_ref[...]                                    # (B, H) f32

        # static, lane-aligned slices of the packed parameter row
        b1 = pvec_ref[:, O_B1:O_B1 + H2]
        g1 = pvec_ref[:, O_G1:O_G1 + H2]
        be1 = pvec_ref[:, O_BE1:O_BE1 + H2]
        b2 = pvec_ref[:, O_B2:O_B2 + Hpad]
        g2 = pvec_ref[:, O_G2:O_G2 + Hpad]
        be2 = pvec_ref[:, O_BE2:O_BE2 + Hpad]
        bc = pvec_ref[:, O_BC:O_BC + Cpad]
        mi_b1 = pvec_ref[:, O_MIB1:O_MIB1 + Hpad]
        mi_w2 = pvec_ref[:, O_MIW2:O_MIW2 + Hpad]
        mi_b2 = pvec_ref[:, O_MIB2:O_MIB2 + 1]

        # ---- domain_disentangler -------------------------------------------
        h1 = bn_relu(mm(x, w1_ref[...]) + b1, g1, be1)       # (B, 2H)
        dd = bn_relu(mm(h1, w2_ref[...]) + b2, g2, be2)      # (B, Hpad); cols >= H are 0
        dd_ref[...] = dd                                     # lane-dense store

        # ---- fused domain classifier + MI projections (column-packed) -------
        # grad_reverse is identity in the forward pass.
        # TODO(synk): no custom_vjp — gradients through di_domain_output are not
        # negated if this forward is ever differentiated.
        di_slab = mm(di, wproj_ref[0:H, :])                  # (B, Cpad+Hpad)
        dd_slab = mm(dd, wproj_ref[Hr:Hr + Hpad, :])         # (B, Cpad+Hpad)

        # lane-dense classifier slab: [ dd-classifier | di-classifier ]
        cls_ref[...] = jnp.concatenate(
            [dd_slab[:, :Cpad] + bc, di_slab[:, :Cpad] + bc], axis=-1)

        # ---- MINE mutual-information estimator ------------------------------
        # T(x, y) = ReLU(x @ A + y @ Bw + b1) . w2 + b2
        di_proj = di_slab[:, Cpad:]                          # (B, Hpad)
        dd_proj = dd_slab[:, Cpad:]                          # joint projection
        # batch-roll commutes with the right matmul: roll(dd) @ W == roll(dd @ W),
        # so the marginal reuses the joint projection (no second matmul, no concat).
        # TODO(synk): PyTorch reference shuffles the marginal batch with randperm;
        # we use a deterministic roll-by-1 along the batch axis.
        dd_proj_m = pltpu.roll(dd_proj, shift=1, axis=0)

        h_j = jnp.maximum(di_proj + dd_proj + mi_b1, 0.0)
        h_m = jnp.maximum(di_proj + dd_proj_m + mi_b1, 0.0)
        # H->1 head on VPU/XLU (lane reduce), not a 1-lane MXU dot.
        t_j = jnp.sum(h_j * mi_w2, axis=-1, keepdims=True) + mi_b2   # (B, 1)
        t_m = jnp.sum(h_m * mi_w2, axis=-1, keepdims=True) + mi_b2

        joint_mean = jnp.sum(t_j, axis=(0, 1), keepdims=True) * inv_b
        mmax = jnp.max(t_m, axis=(0, 1), keepdims=True)      # stabilized log-mean-exp
        lme = jnp.log(
            jnp.sum(jnp.exp(t_m - mmax), axis=(0, 1), keepdims=True) * inv_b) + mmax
        mi_ref[0, 0] = jnp.sum(-(joint_mean - lme))           # scalar -> SMEM

    inputs = (features, di_features, packed["w1"], packed["w2"],
              packed["wproj"], packed["pvec"])

    def full(shape):
        return pl.BlockSpec(shape, lambda i: (0,) * len(shape))

    out_shape = (
        jax.ShapeDtypeStruct((B, Hpad), jnp.float32),        # dd_features (lane-padded)
        jax.ShapeDtypeStruct((B, 2 * Cpad), jnp.float32),    # [dd-cls | di-cls] slab
        jax.ShapeDtypeStruct((1, 1), jnp.float32),           # mi_loss (SMEM)
    )
    out_specs = (
        full((B, Hpad)),
        full((B, 2 * Cpad)),
        pl.BlockSpec(memory_space=pltpu.MemorySpace.SMEM),
    )

    # TODO(synk): for production batch sizes, tile only the batch axis (two-pass
    # BN with partial sum / sum-of-squares in VMEM scratch) and mark that axis
    # "parallel" so v7x shards it across its 2 TensorCores; size tiles so
    # 2 x (input tiles) + output tiles + scratch stays well under v7x's 64 MiB
    # VMEM, and prefer >= 512-row tiles on v5e to amortize per-step overhead.
    dd_pad, cls, mi = pl.pallas_call(
        kernel,
        grid=(1,),
        in_specs=[full(tuple(a.shape)) for a in inputs],
        out_specs=out_specs,
        out_shape=out_shape,
        compiler_params=pltpu.CompilerParams(
            dimension_semantics=("arbitrary",),
            vmem_limit_bytes=32 * 1024 * 1024,
        ),
    )(*inputs)

    return {
        "dd_features": dd_pad[:, :H],
        "domain_output": cls[:, :D],
        "di_domain_output": cls[:, Cpad:Cpad + D],
        "mi_loss": mi[0, 0],
    }


def init_params(key, feature_dim, hidden_dim, num_domains):
    """Deterministic PyTorch-style (uniform fan-in) init, pre-transposed, f32."""
    def linear(k, out_f, in_f):
        bound = 1.0 / (in_f ** 0.5)
        kw, kb = jax.random.split(k)
        w = jax.random.uniform(kw, (out_f, in_f), jnp.float32, -bound, bound)
        b = jax.random.uniform(kb, (out_f,), jnp.float32, -bound, bound)
        return w, b

    k1, k2, k3, k4, k5 = jax.random.split(key, 5)
    H = hidden_dim
    H2 = 2 * H

    w1, b1 = linear(k1, H2, feature_dim)
    w2, b2 = linear(k2, H, H2)
    wc, bc = linear(k3, num_domains, H)
    # MutualInformationEstimator(H, H, H): Linear(2H, H) -> ReLU -> Linear(H, 1)
    mi_w1, mi_b1 = linear(k4, H, 2 * H)
    mi_w2, mi_b2 = linear(k5, 1, H)

    return {
        "w1_t": w1.T, "b1": b1[None, :],
        "g1": jnp.ones((1, H2), jnp.float32), "be1": jnp.zeros((1, H2), jnp.float32),
        "w2_t": w2.T, "b2": b2[None, :],
        "g2": jnp.ones((1, H), jnp.float32), "be2": jnp.zeros((1, H), jnp.float32),
        "wc_t": wc.T, "bc": bc[None, :],
        "mi_w1a_t": mi_w1[:, :H].T,   # acts on di_features (x)
        "mi_w1b_t": mi_w1[:, H:].T,   # acts on dd_features (y)
        "mi_b1": mi_b1[None, :],
        "mi_w2_row": mi_w2,           # (1, H) — used as a VPU row, not an MXU dot
        "mi_b2": mi_b2[None, :],      # (1, 1)
    }


def ddn_reference(features, di, p):
    """Pure-JAX f32 reference of the same forward pass (training-mode BN)."""
    def bn(h, g, be):
        m = jnp.mean(h, axis=0, keepdims=True)
        v = jnp.mean((h - m) ** 2, axis=0, keepdims=True)
        return (h - m) * jax.lax.rsqrt(v + BN_EPS) * g + be

    h1 = jnp.maximum(bn(features @ p["w1_t"] + p["b1"], p["g1"], p["be1"]), 0.0)
    dd = jnp.maximum(bn(h1 @ p["w2_t"] + p["b2"], p["g2"], p["be2"]), 0.0)
    dom = dd @ p["wc_t"] + p["bc"]
    di_dom = di @ p["wc_t"] + p["bc"]

    def t_net(a, b):
        h = jnp.maximum(a @ p["mi_w1a_t"] + b @ p["mi_w1b_t"] + p["mi_b1"], 0.0)
        return jnp.sum(h * p["mi_w2_row"], axis=-1, keepdims=True) + p["mi_b2"]

    joint = t_net(di, dd)

    def mi_with(dd_shuf):
        marg = t_net(di, dd_shuf)
        return -(jnp.mean(joint) - jnp.log(jnp.mean(jnp.exp(marg))))

    # pltpu.roll is a hardware rotate; accept either orientation of the fixed
    # batch permutation (any fixed permutation is a valid MINE marginal forward).
    return dd, dom, di_dom, mi_with(jnp.roll(dd, 1, axis=0)), mi_with(jnp.roll(dd, -1, axis=0))


if __name__ == "__main__":
    B, FEATURE_DIM, HIDDEN_DIM, NUM_DOMAINS = 8, 32, 32, 4

    key = jax.random.PRNGKey(0)
    k_params, k_feat, k_di = jax.random.split(key, 3)

    params = init_params(k_params, FEATURE_DIM, HIDDEN_DIM, NUM_DOMAINS)
    features = jax.random.normal(k_feat, (B, FEATURE_DIM), jnp.float32)
    di_features = jax.random.normal(k_di, (B, HIDDEN_DIM), jnp.float32)

    # One-time packing, hoisted out of the per-step path.
    packed_f32 = pack_params(params, matmul_dtype=jnp.float32)   # exact-f32 check path
    packed_bf16 = pack_params(params)                            # default bf16 MXU path
    jax.block_until_ready((packed_f32, packed_bf16))

    # ---- exact f32 path: tight correctness check against the pure-JAX reference
    out = ddn_forward(features, di_features, packed_f32, num_domains=NUM_DOMAINS)
    jax.block_until_ready(out)

    assert out["dd_features"].shape == (B, HIDDEN_DIM)
    assert out["domain_output"].shape == (B, NUM_DOMAINS)
    assert out["di_domain_output"].shape == (B, NUM_DOMAINS)
    assert out["mi_loss"].shape == ()

    dd_r, dom_r, didom_r, mi_pos, mi_neg = ddn_reference(features, di_features, params)
    assert jnp.allclose(out["dd_features"], dd_r, rtol=1e-4, atol=1e-4)
    assert jnp.allclose(out["domain_output"], dom_r, rtol=1e-4, atol=1e-4)
    assert jnp.allclose(out["di_domain_output"], didom_r, rtol=1e-4, atol=1e-4)
    mi_k = out["mi_loss"]
    assert bool(jnp.isclose(mi_k, mi_pos, rtol=1e-4, atol=1e-4)
                | jnp.isclose(mi_k, mi_neg, rtol=1e-4, atol=1e-4))

    # ---- default bf16-MXU path: exercise it and sanity-check (bf16 rounding feeds
    # the BatchNorm statistics, so only shape / finiteness are asserted here).
    out_bf = ddn_forward(features, di_features, packed_bf16, num_domains=NUM_DOMAINS)
    jax.block_until_ready(out_bf)
    assert out_bf["dd_features"].shape == (B, HIDDEN_DIM)
    assert out_bf["domain_output"].shape == (B, NUM_DOMAINS)
    assert out_bf["di_domain_output"].shape == (B, NUM_DOMAINS)
    for v in (out_bf["dd_features"], out_bf["domain_output"],
              out_bf["di_domain_output"], out_bf["mi_loss"]):
        assert bool(jnp.all(jnp.isfinite(v)))

    print("KERNEL_OK")
</pallas_src>

<mosaic_0001>
module attributes {stable_mosaic.version = 11 : i64} {
  func.func @kernel(%arg0: i32, %arg1: memref<8x32xf32, #tpu.memory_space<vmem>>, %arg2: memref<8x32xf32, #tpu.memory_space<vmem>>, %arg3: memref<32x64xf32, #tpu.memory_space<vmem>>, %arg4: memref<64x128xf32, #tpu.memory_space<vmem>>, %arg5: memref<160x256xf32, #tpu.memory_space<vmem>>, %arg6: memref<1x1280xf32, #tpu.memory_space<vmem>>, %arg7: memref<8x128xf32, #tpu.memory_space<vmem>>, %arg8: memref<8x256xf32, #tpu.memory_space<vmem>>, %arg9: memref<1x1xf32, #tpu.memory_space<smem>>) attributes {dimension_semantics = [#tpu.dimension_semantics<arbitrary>], iteration_bounds = array<i64: 1>, scalar_prefetch = 0 : i64, scratch_operands = 0 : i64, tpu.core_type = #tpu.core_type<tc>, window_params = [{pipeline_mode = #tpu.pipeline_mode<synchronous>, transform_indices = @transform_0, window_bounds = array<i64: 8, 32>}, {pipeline_mode = #tpu.pipeline_mode<synchronous>, transform_indices = @transform_1, window_bounds = array<i64: 8, 32>}, {pipeline_mode = #tpu.pipeline_mode<synchronous>, transform_indices = @transform_2, window_bounds = array<i64: 32, 64>}, {pipeline_mode = #tpu.pipeline_mode<synchronous>, transform_indices = @transform_3, window_bounds = array<i64: 64, 128>}, {pipeline_mode = #tpu.pipeline_mode<synchronous>, transform_indices = @transform_4, window_bounds = array<i64: 160, 256>}, {pipeline_mode = #tpu.pipeline_mode<synchronous>, transform_indices = @transform_5, window_bounds = array<i64: 1, 1280>}, {pipeline_mode = #tpu.pipeline_mode<synchronous>, transform_indices = @transform_6, window_bounds = array<i64: 8, 128>}, {pipeline_mode = #tpu.pipeline_mode<synchronous>, transform_indices = @transform_7, window_bounds = array<i64: 8, 256>}, {transform_indices = @transform_8, window_bounds = array<i64: 1, 1>}]} {
    %c0 = arith.constant 0 : index
    %c0_0 = arith.constant 0 : index
    %0 = vector.load %arg1[%c0, %c0_0] : memref<8x32xf32, #tpu.memory_space<vmem>>, vector<8x32xf32>
    %c0_1 = arith.constant 0 : index
    %c0_2 = arith.constant 0 : index
    %1 = vector.load %arg2[%c0_1, %c0_2] : memref<8x32xf32, #tpu.memory_space<vmem>>, vector<8x32xf32>
    %c0_3 = arith.constant 0 : index
    %c0_4 = arith.constant 0 : index
    %2 = vector.load %arg6[%c0_3, %c0_4] : memref<1x1280xf32, #tpu.memory_space<vmem>>, vector<1x64xf32>
    %c0_5 = arith.constant 0 : index
    %c128 = arith.constant 128 : index
    %3 = vector.load %arg6[%c0_5, %c128] : memref<1x1280xf32, #tpu.memory_space<vmem>>, vector<1x64xf32>
    %c0_6 = arith.constant 0 : index
    %c256 = arith.constant 256 : index
    %4 = vector.load %arg6[%c0_6, %c256] : memref<1x1280xf32, #tpu.memory_space<vmem>>, vector<1x64xf32>
    %c0_7 = arith.constant 0 : index
    %c384 = arith.constant 384 : index
    %5 = vector.load %arg6[%c0_7, %c384] : memref<1x1280xf32, #tpu.memory_space<vmem>>, vector<1x128xf32>
    %c0_8 = arith.constant 0 : index
    %c512 = arith.constant 512 : index
    %6 = vector.load %arg6[%c0_8, %c512] : memref<1x1280xf32, #tpu.memory_space<vmem>>, vector<1x128xf32>
    %c0_9 = arith.constant 0 : index
    %c640 = arith.constant 640 : index
    %7 = vector.load %arg6[%c0_9, %c640] : memref<1x1280xf32, #tpu.memory_space<vmem>>, vector<1x128xf32>
    %c0_10 = arith.constant 0 : index
    %c768 = arith.constant 768 : index
    %8 = vector.load %arg6[%c0_10, %c768] : memref<1x1280xf32, #tpu.memory_space<vmem>>, vector<1x128xf32>
    %c0_11 = arith.constant 0 : index
    %c896 = arith.constant 896 : index
    %9 = vector.load %arg6[%c0_11, %c896] : memref<1x1280xf32, #tpu.memory_space<vmem>>, vector<1x128xf32>
    %c0_12 = arith.constant 0 : index
    %c1024 = arith.constant 1024 : index
    %10 = vector.load %arg6[%c0_12, %c1024] : memref<1x1280xf32, #tpu.memory_space<vmem>>, vector<1x128xf32>
    %c0_13 = arith.constant 0 : index
    %c1152 = arith.constant 1152 : index
    %11 = vector.load %arg6[%c0_13, %c1152] : memref<1x1280xf32, #tpu.memory_space<vmem>>, vector<1x1xf32>
    %c0_14 = arith.constant 0 : index
    %c0_15 = arith.constant 0 : index
    %12 = vector.load %arg3[%c0_14, %c0_15] : memref<32x64xf32, #tpu.memory_space<vmem>>, vector<32x64xf32>
    %cst = arith.constant dense<0.000000e+00> : vector<8x64xf32>
    %13 = tpu.matmul %0, %12, %cst {dimension_numbers = #tpu.dot_dimension_numbers<[1], [0], [0], [1], [0, 0, 1, 1], [], []>} : vector<8x32xf32>, vector<32x64xf32>, vector<8x64xf32> -> vector<8x64xf32>
    %14 = vector.broadcast %2 : vector<1x64xf32> to vector<8x64xf32>
    %15 = arith.addf %13, %14 : vector<8x64xf32>
    %cst_16 = arith.constant dense<0.000000e+00> : vector<64xf32>
    %16 = vector.multi_reduction <add>, %15, %cst_16 [0] : vector<8x64xf32> to vector<64xf32>
    %17 = vector.shape_cast %16 : vector<64xf32> to vector<1x64xf32>
    %18 = arith.mulf %15, %15 : vector<8x64xf32>
    %cst_17 = arith.constant dense<0.000000e+00> : vector<64xf32>
    %19 = vector.multi_reduction <add>, %18, %cst_17 [0] : vector<8x64xf32> to vector<64xf32>
    %20 = vector.shape_cast %19 : vector<64xf32> to vector<1x64xf32>
    %cst_18 = arith.constant 1.250000e-01 : f32
    %21 = vector.broadcast %cst_18 : f32 to vector<1x64xf32>
    %22 = arith.mulf %17, %21 : vector<1x64xf32>
    %cst_19 = arith.constant 1.250000e-01 : f32
    %23 = vector.broadcast %cst_19 : f32 to vector<1x64xf32>
    %24 = arith.mulf %20, %23 : vector<1x64xf32>
    %25 = arith.mulf %22, %22 : vector<1x64xf32>
    %26 = arith.subf %24, %25 : vector<1x64xf32>
    %cst_20 = arith.constant 0.000000e+00 : f32
    %27 = vector.broadcast %cst_20 : f32 to vector<1x64xf32>
    %28 = arith.maximumf %26, %27 : vector<1x64xf32>
    %29 = vector.broadcast %22 : vector<1x64xf32> to vector<8x64xf32>
    %30 = arith.subf %15, %29 : vector<8x64xf32>
    %cst_21 = arith.constant 9.99999974E-6 : f32
    %31 = vector.broadcast %cst_21 : f32 to vector<1x64xf32>
    %32 = arith.addf %28, %31 : vector<1x64xf32>
    %33 = math.rsqrt %32 : vector<1x64xf32>
    %34 = vector.broadcast %33 : vector<1x64xf32> to vector<8x64xf32>
    %35 = arith.mulf %30, %34 : vector<8x64xf32>
    %36 = vector.broadcast %3 : vector<1x64xf32> to vector<8x64xf32>
    %37 = arith.mulf %35, %36 : vector<8x64xf32>
    %38 = vector.broadcast %4 : vector<1x64xf32> to vector<8x64xf32>
    %39 = arith.addf %37, %38 : vector<8x64xf32>
    %cst_22 = arith.constant 0.000000e+00 : f32
    %40 = vector.broadcast %cst_22 : f32 to vector<8x64xf32>
    %41 = arith.maximumf %39, %40 : vector<8x64xf32>
    %c0_23 = arith.constant 0 : index
    %c0_24 = arith.constant 0 : index
    %42 = vector.load %arg4[%c0_23, %c0_24] : memref<64x128xf32, #tpu.memory_space<vmem>>, vector<64x128xf32>
    %cst_25 = arith.constant dense<0.000000e+00> : vector<8x128xf32>
    %43 = tpu.matmul %41, %42, %cst_25 {dimension_numbers = #tpu.dot_dimension_numbers<[1], [0], [0], [1], [0, 0, 1, 1], [], []>} : vector<8x64xf32>, vector<64x128xf32>, vector<8x128xf32> -> vector<8x128xf32>
    %44 = vector.broadcast %5 : vector<1x128xf32> to vector<8x128xf32>
    %45 = arith.addf %43, %44 : vector<8x128xf32>
    %cst_26 = arith.constant dense<0.000000e+00> : vector<128xf32>
    %46 = vector.multi_reduction <add>, %45, %cst_26 [0] : vector<8x128xf32> to vector<128xf32>
    %47 = vector.shape_cast %46 : vector<128xf32> to vector<1x128xf32>
    %48 = arith.mulf %45, %45 : vector<8x128xf32>
    %cst_27 = arith.constant dense<0.000000e+00> : vector<128xf32>
    %49 = vector.multi_reduction <add>, %48, %cst_27 [0] : vector<8x128xf32> to vector<128xf32>
    %50 = vector.shape_cast %49 : vector<128xf32> to vector<1x128xf32>
    %cst_28 = arith.constant 1.250000e-01 : f32
    %51 = vector.broadcast %cst_28 : f32 to vector<1x128xf32>
    %52 = arith.mulf %47, %51 : vector<1x128xf32>
    %cst_29 = arith.constant 1.250000e-01 : f32
    %53 = vector.broadcast %cst_29 : f32 to vector<1x128xf32>
    %54 = arith.mulf %50, %53 : vector<1x128xf32>
    %55 = arith.mulf %52, %52 : vector<1x128xf32>
    %56 = arith.subf %54, %55 : vector<1x128xf32>
    %cst_30 = arith.constant 0.000000e+00 : f32
    %57 = vector.broadcast %cst_30 : f32 to vector<1x128xf32>
    %58 = arith.maximumf %56, %57 : vector<1x128xf32>
    %59 = vector.broadcast %52 : vector<1x128xf32> to vector<8x128xf32>
    %60 = arith.subf %45, %59 : vector<8x128xf32>
    %cst_31 = arith.constant 9.99999974E-6 : f32
    %61 = vector.broadcast %cst_31 : f32 to vector<1x128xf32>
    %62 = arith.addf %58, %61 : vector<1x128xf32>
    %63 = math.rsqrt %62 : vector<1x128xf32>
    %64 = vector.broadcast %63 : vector<1x128xf32> to vector<8x128xf32>
    %65 = arith.mulf %60, %64 : vector<8x128xf32>
    %66 = vector.broadcast %6 : vector<1x128xf32> to vector<8x128xf32>
    %67 = arith.mulf %65, %66 : vector<8x128xf32>
    %68 = vector.broadcast %7 : vector<1x128xf32> to vector<8x128xf32>
    %69 = arith.addf %67, %68 : vector<8x128xf32>
    %cst_32 = arith.constant 0.000000e+00 : f32
    %70 = vector.broadcast %cst_32 : f32 to vector<8x128xf32>
    %71 = arith.maximumf %69, %70 : vector<8x128xf32>
    %c0_33 = arith.constant 0 : index
    %c0_34 = arith.constant 0 : index
    %72 = vector.load %arg7[%c0_33, %c0_34] : memref<8x128xf32, #tpu.memory_space<vmem>>, vector<8x128xf32>
    tpu.vector_store %arg7[%c0_33, %c0_34], %71 {strides = array<i32>} : memref<8x128xf32, #tpu.memory_space<vmem>>, vector<8x128xf32>,
    %c0_35 = arith.constant 0 : index
    %c0_36 = arith.constant 0 : index
    %73 = vector.load %arg5[%c0_35, %c0_36] : memref<160x256xf32, #tpu.memory_space<vmem>>, vector<32x256xf32>
    %cst_37 = arith.constant dense<0.000000e+00> : vector<8x256xf32>
    %74 = tpu.matmul %1, %73, %cst_37 {dimension_numbers = #tpu.dot_dimension_numbers<[1], [0], [0], [1], [0, 0, 1, 1], [], []>} : vector<8x32xf32>, vector<32x256xf32>, vector<8x256xf32> -> vector<8x256xf32>
    %c32 = arith.constant 32 : index
    %c0_38 = arith.constant 0 : index
    %75 = vector.load %arg5[%c32, %c0_38] : memref<160x256xf32, #tpu.memory_space<vmem>>, vector<128x256xf32>
    %cst_39 = arith.constant dense<0.000000e+00> : vector<8x256xf32>
    %76 = tpu.matmul %71, %75, %cst_39 {dimension_numbers = #tpu.dot_dimension_numbers<[1], [0], [0], [1], [0, 0, 1, 1], [], []>} : vector<8x128xf32>, vector<128x256xf32>, vector<8x256xf32> -> vector<8x256xf32>
    %77 = vector.extract_strided_slice %76 {offsets = [0, 0], sizes = [8, 128], strides = [1, 1]} : vector<8x256xf32> to vector<8x128xf32>
    %78 = vector.broadcast %8 : vector<1x128xf32> to vector<8x128xf32>
    %79 = arith.addf %77, %78 : vector<8x128xf32>
    %80 = vector.extract_strided_slice %74 {offsets = [0, 0], sizes = [8, 128], strides = [1, 1]} : vector<8x256xf32> to vector<8x128xf32>
    %81 = vector.broadcast %8 : vector<1x128xf32> to vector<8x128xf32>
    %82 = arith.addf %80, %81 : vector<8x128xf32>
    %83 = tpu.concatenate %79, %82 in 1 : vector<8x128xf32>, vector<8x128xf32> -> vector<8x256xf32>
    %c0_40 = arith.constant 0 : index
    %c0_41 = arith.constant 0 : index
    %84 = vector.load %arg8[%c0_40, %c0_41] : memref<8x256xf32, #tpu.memory_space<vmem>>, vector<8x256xf32>
    tpu.vector_store %arg8[%c0_40, %c0_41], %83 {strides = array<i32>} : memref<8x256xf32, #tpu.memory_space<vmem>>, vector<8x256xf32>,
    %85 = vector.extract_strided_slice %74 {offsets = [0, 128], sizes = [8, 128], strides = [1, 1]} : vector<8x256xf32> to vector<8x128xf32>
    %86 = vector.extract_strided_slice %76 {offsets = [0, 128], sizes = [8, 128], strides = [1, 1]} : vector<8x256xf32> to vector<8x128xf32>
    %c1_i32 = arith.constant 1 : i32
    %87 = tpu.dynamic_rotate %86 by %c1_i32 dim 0 : vector<8x128xf32>, i32 -> vector<8x128xf32>
    %88 = arith.addf %85, %86 : vector<8x128xf32>
    %89 = vector.broadcast %9 : vector<1x128xf32> to vector<8x128xf32>
    %90 = arith.addf %88, %89 : vector<8x128xf32>
    %cst_42 = arith.constant 0.000000e+00 : f32
    %91 = vector.broadcast %cst_42 : f32 to vector<8x128xf32>
    %92 = arith.maximumf %90, %91 : vector<8x128xf32>
    %93 = arith.addf %85, %87 : vector<8x128xf32>
    %94 = vector.broadcast %9 : vector<1x128xf32> to vector<8x128xf32>
    %95 = arith.addf %93, %94 : vector<8x128xf32>
    %cst_43 = arith.constant 0.000000e+00 : f32
    %96 = vector.broadcast %cst_43 : f32 to vector<8x128xf32>
    %97 = arith.maximumf %95, %96 : vector<8x128xf32>
    %98 = vector.broadcast %10 : vector<1x128xf32> to vector<8x128xf32>
    %99 = arith.mulf %92, %98 : vector<8x128xf32>
    %cst_44 = arith.constant dense<0.000000e+00> : vector<8xf32>
    %100 = vector.multi_reduction <add>, %99, %cst_44 [1] : vector<8x128xf32> to vector<8xf32>
    %101 = vector.shape_cast %100 : vector<8xf32> to vector<8x1xf32>
    %102 = vector.broadcast %11 : vector<1x1xf32> to vector<8x1xf32>
    %103 = arith.addf %101, %102 : vector<8x1xf32>
    %104 = vector.broadcast %10 : vector<1x128xf32> to vector<8x128xf32>
    %105 = arith.mulf %97, %104 : vector<8x128xf32>
    %cst_45 = arith.constant dense<0.000000e+00> : vector<8xf32>
    %106 = vector.multi_reduction <add>, %105, %cst_45 [1] : vector<8x128xf32> to vector<8xf32>
    %107 = vector.shape_cast %106 : vector<8xf32> to vector<8x1xf32>
    %108 = vector.broadcast %11 : vector<1x1xf32> to vector<8x1xf32>
    %109 = arith.addf %107, %108 : vector<8x1xf32>
    %110 = vector.shape_cast %103 : vector<8x1xf32> to vector<1x8x1xf32>
    %cst_46 = arith.constant dense<0.000000e+00> : vector<1xf32>
    %111 = vector.multi_reduction <add>, %110, %cst_46 [1, 2] : vector<1x8x1xf32> to vector<1xf32>
    %112 = vector.shape_cast %111 : vector<1xf32> to vector<1x1x1xf32>
    %113 = vector.extract %112[0, 0, 0] : f32 from vector<1x1x1xf32>
    %114 = vector.broadcast %113 : f32 to vector<1x1xf32>
    %cst_47 = arith.constant 1.250000e-01 : f32
    %115 = vector.broadcast %cst_47 : f32 to vector<1x1xf32>
    %116 = arith.mulf %114, %115 : vector<1x1xf32>
    %117 = vector.shape_cast %109 : vector<8x1xf32> to vector<1x8x1xf32>
    %cst_48 = arith.constant dense<0xFF800000> : vector<1xf32>
    %118 = vector.multi_reduction <maximumf>, %117, %cst_48 [1, 2] : vector<1x8x1xf32> to vector<1xf32>
    %119 = vector.shape_cast %118 : vector<1xf32> to vector<1x1x1xf32>
    %120 = vector.extract %119[0, 0, 0] : f32 from vector<1x1x1xf32>
    %121 = vector.broadcast %120 : f32 to vector<1x1xf32>
    %122 = vector.broadcast %121 : vector<1x1xf32> to vector<8x1xf32>
    %123 = arith.subf %109, %122 : vector<8x1xf32>
    %124 = math.exp %123 : vector<8x1xf32>
    %125 = vector.shape_cast %124 : vector<8x1xf32> to vector<1x8x1xf32>
    %cst_49 = arith.constant dense<0.000000e+00> : vector<1xf32>
    %126 = vector.multi_reduction <add>, %125, %cst_49 [1, 2] : vector<1x8x1xf32> to vector<1xf32>
    %127 = vector.shape_cast %126 : vector<1xf32> to vector<1x1x1xf32>
    %128 = vector.extract %127[0, 0, 0] : f32 from vector<1x1x1xf32>
    %129 = vector.broadcast %128 : f32 to vector<1x1xf32>
    %cst_50 = arith.constant 1.250000e-01 : f32
    %130 = vector.broadcast %cst_50 : f32 to vector<1x1xf32>
    %131 = arith.mulf %129, %130 : vector<1x1xf32>
    %132 = math.log %131 : vector<1x1xf32>
    %133 = arith.addf %132, %121 : vector<1x1xf32>
    %134 = arith.subf %116, %133 : vector<1x1xf32>
    %cst_51 = arith.constant 0.000000e+00 : f32
    %135 = vector.broadcast %cst_51 : f32 to vector<1x1xf32>
    %136 = arith.subf %135, %134 : vector<1x1xf32>
    %137 = vector.shape_cast %136 : vector<1x1xf32> to vector<1x1x1xf32>
    %cst_52 = arith.constant dense<0.000000e+00> : vector<1xf32>
    %138 = vector.multi_reduction <add>, %137, %cst_52 [1, 2] : vector<1x1x1xf32> to vector<1xf32>
    %139 = vector.shape_cast %138 : vector<1xf32> to vector<1x1x1xf32>
    %140 = vector.extract %139[0, 0, 0] : f32 from vector<1x1x1xf32>
    %c0_53 = arith.constant 0 : index
    %c0_54 = arith.constant 0 : index
    %141 = memref.load %arg9[%c0_53, %c0_54] : memref<1x1xf32, #tpu.memory_space<smem>>
    memref.store %140, %arg9[%c0_53, %c0_54] : memref<1x1xf32, #tpu.memory_space<smem>>
    return
  }
  func.func @transform_0(%arg0: i32) -> (i32, i32) {
    %c0_i32 = arith.constant 0 : i32
    %c0_i32_0 = arith.constant 0 : i32
    %c0_i32_1 = arith.constant 0 : i32
    return %c0_i32, %c0_i32_0 : i32, i32
  }
  func.func @transform_1(%arg0: i32) -> (i32, i32) {
    %c0_i32 = arith.constant 0 : i32
    %c0_i32_0 = arith.constant 0 : i32
    %c0_i32_1 = arith.constant 0 : i32
    return %c0_i32, %c0_i32_0 : i32, i32
  }
  func.func @transform_2(%arg0: i32) -> (i32, i32) {
    %c0_i32 = arith.constant 0 : i32
    %c0_i32_0 = arith.constant 0 : i32
    %c0_i32_1 = arith.constant 0 : i32
    return %c0_i32, %c0_i32_0 : i32, i32
  }
  func.func @transform_3(%arg0: i32) -> (i32, i32) {
    %c0_i32 = arith.constant 0 : i32
    %c0_i32_0 = arith.constant 0 : i32
    %c0_i32_1 = arith.constant 0 : i32
    return %c0_i32, %c0_i32_0 : i32, i32
  }
  func.func @transform_4(%arg0: i32) -> (i32, i32) {
    %c0_i32 = arith.constant 0 : i32
    %c0_i32_0 = arith.constant 0 : i32
    %c0_i32_1 = arith.constant 0 : i32
    return %c0_i32, %c0_i32_0 : i32, i32
  }
  func.func @transform_5(%arg0: i32) -> (i32, i32) {
    %c0_i32 = arith.constant 0 : i32
    %c0_i32_0 = arith.constant 0 : i32
    %c0_i32_1 = arith.constant 0 : i32
    return %c0_i32, %c0_i32_0 : i32, i32
  }
  func.func @transform_6(%arg0: i32) -> (i32, i32) {
    %c0_i32 = arith.constant 0 : i32
    %c0_i32_0 = arith.constant 0 : i32
    %c0_i32_1 = arith.constant 0 : i32
    return %c0_i32, %c0_i32_0 : i32, i32
  }
  func.func @transform_7(%arg0: i32) -> (i32, i32) {
    %c0_i32 = arith.constant 0 : i32
    %c0_i32_0 = arith.constant 0 : i32
    %c0_i32_1 = arith.constant 0 : i32
    return %c0_i32, %c0_i32_0 : i32, i32
  }
  func.func @transform_8(%arg0: i32) -> (i32, i32) {
    %c0_i32 = arith.constant 0 : i32
    %c0_i32_0 = arith.constant 0 : i32
    %c0_i32_1 = arith.constant 0 : i32
    return %c0_i32, %c0_i32_0 : i32, i32
  }
}

</mosaic_0001>

<bundles_post_ra>
// kernel: ddn_forward.1
= control target key start
LH: loop header
LB: loop body
LE: loop exit
PB: predicated region body
PF: predicated region fallthrough
CT: control target
= control target key end

     0   :  { %14 = vsyncpa [#allocation3], 0  ;;  %s1186_s0 = inlined_call_operand.hbm [shape: f32[8,32], index: 0, kind: input, shape index: {}]   ;;  %s1187_s1 = inlined_call_operand.hbm [shape: f32[8,32], index: 1, kind: input, shape index: {}]   ;;  %s1188_s2 = inlined_call_operand.hbm [shape: f32[32,64], index: 2, kind: input, shape index: {}]   ;;  %s1189_s3 = inlined_call_operand.hbm [shape: f32[64,128], index: 3, kind: input, shape index: {}]   ;;  %s1190_s4 = inlined_call_operand.hbm [shape: f32[160,256], index: 4, kind: input, shape index: {}]   ;;  %s1191_s5 = inlined_call_operand.hbm [shape: f32[1,1280], index: 5, kind: input, shape index: {}]   ;;  %s1192_s6 = inlined_call_operand.hbm [shape: f32[8,128], index: 6, kind: output, shape index: {0}]   ;;  %s1193_s7 = inlined_call_operand.vmem [shape: f32[8,256], index: 7, kind: output, shape index: {1}]   ;;  %s1194_s8 = inlined_call_operand.hbm [shape: f32[1,1], index: 8, kind: output, shape index: {2}]  }
   0x1   :  { %15 = vsyncpa [#allocation7], 0 }
   0x2   :  { %16 = vsyncpa [#allocation10], 0 }
   0x3   :  { %17 = vsyncpa [#allocation13], 0 }
   0x4   :  { %18 = vsyncpa [#allocation4], 0 }
   0x5   :  { %19 = vsyncpa [#allocation5], 0  ;;  %s998_s27 = smov [#allocation6]   ;;  %s822_s9 = scalar_lea.hbm %s1187_s1, 128 }
   0x6   :  { %s36_s28 = sshll.u32 %s998_s27, 4  ;;  %p823_p0 = scmp.ne.s32.totalorder %s1187_s1, %s822_s9  ;;  %s37_s28 = int_to_ptr.vmem [resolvable:$true] %s36_s28 }
   0x7   :  { %p826_p1 = scmp.lt.u32.totalorder %s822_s9, %s1187_s1 }
   0x9   :  { %p828_p2 = pnand %p826_p1, %p823_p0 }
   0xb   :  { %831 = shalt.err (!%p828_p2)
}
   0xc   :  { %s832_s14 = scalar_lea.vmem %s37_s28, 128  ;;  %p837_p4 = scmp.lt.s32.totalorder %s37_s28, %s37_s28 }
   0xd   :  { %p833_p3 = scmp.ne.s32.totalorder %s37_s28, %s832_s14  ;;  %p838_p5 = scmp.lt.s32.totalorder %s832_s14, %s832_s14 }
   0xf   :  { %p839_p6 = por %p838_p5, %p837_p4 }
  0x11   :  { %p840_p7 = pnand %p839_p6, %p833_p3 }
  0x13   :  { %843 = shalt.err (!%p840_p7)
}
  0x14   :  { %39 = dma.hbm_to_vmem [thread:$0]  %s1187_s1, 128, %s37_s28, [#allocation7]  }
  0x15   :  { %s999_s17 = smov [#allocation9]   ;;  %s1000_s19 = smov [#allocation2]  }
  0x16   :  { %s57_s18 = sshll.u32 %s999_s17, 4  ;;  %s26_s20 = sshll.u32 %s1000_s19, 4  ;;  %s58_s18 = int_to_ptr.vmem [resolvable:$true] %s57_s18  ;;  %s27_s20 = int_to_ptr.vmem [resolvable:$true] %s26_s20 }
  0x17   :  { %s844_s23 = scalar_lea.hbm %s1189_s3, 1024 }
  0x18   :  { %p845_p8 = scmp.ne.s32.totalorder %s1189_s3, %s844_s23  ;;  %p848_p9 = scmp.lt.u32.totalorder %s844_s23, %s1189_s3 }
  0x1a   :  { %p850_p10 = pnand %p848_p9, %p845_p8 }
  0x1c   :  { %853 = shalt.err (!%p850_p10)
}
  0x1d   :  { %s854_s1 = scalar_lea.vmem %s58_s18, 1024  ;;  %p859_p12 = scmp.lt.s32.totalorder %s58_s18, %s58_s18 }
  0x1e   :  { %p855_p11 = scmp.ne.s32.totalorder %s58_s18, %s854_s1  ;;  %p860_p13 = scmp.lt.s32.totalorder %s854_s1, %s854_s1 }
  0x20   :  { %p861_p0 = por %p860_p13, %p859_p12 }
  0x22   :  { %p862_p1 = pnand %p861_p0, %p855_p11 }
  0x24   :  { %865 = shalt.err (!%p862_p1)
}
  0x25   :  { %s1001_s28 = smov 128   ;;  %s1002_s29 = smov 8  }
  0x26   :  { %63 = dma.hbm_to_vmem [thread:$0]  %s1189_s3, 1024, %s58_s18, [#allocation10], %s1001_s28, %s1001_s28, %s1002_s29  }
  0x27   :  { %s866_s12 = scalar_lea.hbm %s1186_s0, 128 }
  0x28   :  { %p867_p2 = scmp.ne.s32.totalorder %s1186_s0, %s866_s12  ;;  %p870_p3 = scmp.lt.u32.totalorder %s866_s12, %s1186_s0 }
  0x2a   :  { %p872_p4 = pnand %p870_p3, %p867_p2 }
  0x2c   :  { %875 = shalt.err (!%p872_p4)
}
  0x2d   :  { %s876_s17 = scalar_lea.vmem %s27_s20, 128  ;;  %p881_p6 = scmp.lt.s32.totalorder %s27_s20, %s27_s20 }
  0x2e   :  { %p877_p5 = scmp.ne.s32.totalorder %s27_s20, %s876_s17  ;;  %p882_p7 = scmp.lt.s32.totalorder %s876_s17, %s876_s17 }
  0x30   :  { %p883_p8 = por %p882_p7, %p881_p6 }
  0x32   :  { %p884_p9 = pnand %p883_p8, %p877_p5 }
  0x34   :  { %887 = shalt.err (!%p884_p9)
}
  0x35   :  { %29 = dma.hbm_to_vmem [thread:$0]  %s1186_s0, 128, %s27_s20, [#allocation3]  }
  0x36   :  { %s1003_s19 = smov [#allocation8]   ;;  %s1004_s22 = smov [#allocation11]  }
  0x37   :  { %s45_s21 = sshll.u32 %s1003_s19, 4  ;;  %s69_s23 = sshll.u32 %s1004_s22, 4  ;;  %s46_s21 = int_to_ptr.vmem [resolvable:$true] %s45_s21  ;;  %s70_s23 = int_to_ptr.vmem [resolvable:$true] %s69_s23 }
  0x38   :  { %s888_s26 = scalar_lea.hbm %s1188_s2, 512 }
  0x39   :  { %p889_p10 = scmp.ne.s32.totalorder %s1188_s2, %s888_s26  ;;  %p892_p11 = scmp.lt.u32.totalorder %s888_s26, %s1188_s2 }
  0x3b   :  { %p894_p12 = pnand %p892_p11, %p889_p10 }
  0x3d   :  { %897 = shalt.err (!%p894_p12)
}
  0x3e   :  { %s898_s0 = scalar_lea.vmem %s46_s21, 512  ;;  %p903_p0 = scmp.lt.s32.totalorder %s46_s21, %s46_s21 }
  0x3f   :  { %p899_p13 = scmp.ne.s32.totalorder %s46_s21, %s898_s0  ;;  %p904_p1 = scmp.lt.s32.totalorder %s898_s0, %s898_s0 }
  0x41   :  { %p905_p2 = por %p904_p1, %p903_p0 }
  0x43   :  { %p906_p3 = pnand %p905_p2, %p899_p13 }
  0x45   :  { %909 = shalt.err (!%p906_p3)
}
  0x46   :  { %51 = dma.hbm_to_vmem [thread:$0]  %s1188_s2, 512, %s46_s21, [#allocation7], %s1001_s28, %s1001_s28, %s1002_s29  }
  0x47   :  { %s910_s13 = scalar_lea.hbm %s1190_s4, 5120 }
  0x48   :  { %p911_p4 = scmp.ne.s32.totalorder %s1190_s4, %s910_s13  ;;  %p914_p5 = scmp.lt.u32.totalorder %s910_s13, %s1190_s4 }
  0x4a   :  { %p916_p6 = pnand %p914_p5, %p911_p4 }
  0x4c   :  { %919 = shalt.err (!%p916_p6)
}
  0x4d   :  { %s920_s3 = scalar_lea.vmem %s70_s23, 5120  ;;  %p925_p8 = scmp.lt.s32.totalorder %s70_s23, %s70_s23 }
  0x4e   :  { %p921_p7 = scmp.ne.s32.totalorder %s70_s23, %s920_s3  ;;  %p926_p9 = scmp.lt.s32.totalorder %s920_s3, %s920_s3 }
  0x50   :  { %p927_p10 = por %p926_p9, %p925_p8 }
  0x52   :  { %p928_p11 = pnand %p927_p10, %p921_p7 }
  0x54   :  { %931 = shalt.err (!%p928_p11)
}
  0x55   :  { %s1005_s2 = smov 256   ;;  %s1006_s28 = smov 16  }
  0x56   :  { %75 = dma.hbm_to_vmem [thread:$0]  %s1190_s4, 5120, %s70_s23, [#allocation10], %s1005_s2, %s1005_s2, %s1006_s28  }
  0x57   :  { %s1007_s19 = smov [#allocation12]   ;;  %s932_s25 = scalar_lea.hbm %s1191_s5, 160 }
  0x58   :  { %s82_s21 = sshll.u32 %s1007_s19, 4  ;;  %p933_p12 = scmp.ne.s32.totalorder %s1191_s5, %s932_s25  ;;  %s83_s21 = int_to_ptr.vmem [resolvable:$true] %s82_s21 }
  0x59   :  { %p936_p13 = scmp.lt.u32.totalorder %s932_s25, %s1191_s5 }
  0x5b   :  { %p938_p0 = pnand %p936_p13, %p933_p12 }
  0x5d   :  { %941 = shalt.err (!%p938_p0)
}
  0x5e   :  { %s942_s9 = scalar_lea.vmem %s83_s21, 160  ;;  %p947_p2 = scmp.lt.s32.totalorder %s83_s21, %s83_s21 }
  0x5f   :  { %p943_p1 = scmp.ne.s32.totalorder %s83_s21, %s942_s9  ;;  %p948_p3 = scmp.lt.s32.totalorder %s942_s9, %s942_s9 }
  0x61   :  { %p949_p4 = por %p948_p3, %p947_p2 }
  0x63   :  { %p950_p5 = pnand %p949_p4, %p943_p1 }
  0x65   :  { %953 = shalt.err (!%p950_p5)
}
  0x66   :  { %85 = dma.hbm_to_vmem [thread:$0]  %s1191_s5, 160, %s83_s21, [#allocation13]  }
  0x67   :  { %986 = dma.done.wait [#allocation3], 128  }
  0x68   :  { %987 = vsyncadd [#allocation3], 4294967168 }
  0x69   :  { %988 = dma.done.wait [#allocation7], 640  }
  0x6a   :  { %989 = vsyncadd [#allocation7], 4294966656 }
  0x6b   :  { %990 = dma.done.wait [#allocation10], 6144  }
  0x6c   :  { %991 = vsyncadd [#allocation10], 4294961152 }
  0x6d   :  { %992 = dma.done.wait [#allocation13], 160  }
  0x6e   :  { %993 = vsyncadd [#allocation13], 4294967136  ;;  %v1008_v0 = vmov 0.0|0.0   ;;  %vm1009_vm0 = vmmov 0   ;;  %v1010_v1 = vmov 0.0   ;;  %v116_v2 = vld [vmem:[#allocation8] sm:$0xff] }
  0x6f   :  { %733 = vmatprep.subr.bf16.mxu1 %v1008_v0  ;;  %711 = vmatprep.mubr.msk.f32.mxu1 %vm1009_vm0, %v1010_v1  ;;  %v117_v3 = vld [vmem:[#allocation8 + $0x8] sm:$0xff]  ;;  %v118_v4 = vld [vmem:[#allocation8 + $0x10] sm:$0xff]  ;;  %v119_v6 = vld [vmem:[#allocation8 + $0x18] sm:$0xff]  ;;  %vm126_vm1 = vcmask 261120   ;;  %vm200_vm2 = vcmask 523264   ;;  %vm593_vm3 = vcmask 7168  }
  0x70   :  { %543 = vmatprep.mubr.f32.mxu0 %v1010_v1  ;;  %v734_v5 = vpack.c.bf16 %v117_v3, %v116_v2  ;;  %v737_v7 = vpack.c.bf16 %v119_v6, %v118_v4  ;;  %v104_v8 = vld [vmem:[#allocation2] sm:$0xff]  ;;  %v240_v9 = vld [vmem:[#allocation9] sm:$0xff]  ;;  %v241_v10 = vld [vmem:[#allocation9 + $0x8] sm:$0xff]  ;;  %s1011_s12 = smov [#allocation14]  }
  0x71   :  { %v740_v11 = vpack.c.bf16 %v241_v10, %v240_v9  ;;  %v242_v12 = vld [vmem:[#allocation9 + $0x10] sm:$0xff]  ;;  %v243_v13 = vld [vmem:[#allocation9 + $0x18] sm:$0xff]  ;;  %v244_v15 = vld [vmem:[#allocation9 + $0x20] sm:$0xff]  ;;  %s647_s13 = sshll.u32 %s1011_s12, 4  ;;  %s648_s13 = int_to_ptr.vmem [resolvable:$true] %s647_s13 }
  0x72   :  { %735 = vmatpush3.bf16.msra.mxu1 %v734_v5  ;;  %v743_v14 = vpack.c.bf16 %v243_v13, %v242_v12  ;;  %v245_v16 = vld [vmem:[#allocation9 + $0x28] sm:$0xff]  ;;  %v246_v18 = vld [vmem:[#allocation9 + $0x30] sm:$0xff]  ;;  %v247_v19 = vld [vmem:[#allocation9 + $0x38] sm:$0xff]  ;;  %s954_s14 = scalar_lea.vmem %s648_s13, 128  ;;  %p959_p7 = scmp.lt.s32.totalorder %s648_s13, %s648_s13 }
  0x73   :  { %736 = vmatprep.subr.bf16.mxu1 %v1008_v0  ;;  %v746_v17 = vpack.c.bf16 %v245_v16, %v244_v15  ;;  %v749_v20 = vpack.c.bf16 %v247_v19, %v246_v18  ;;  %v676_v21 = vld [vmem:[#allocation12] ss:$0 sm:$0xff]  ;;  %v678_v48 = vld [vmem:[#allocation12 + $0x1] ss:$0 sm:$0xff]  ;;  %v679_v50 = vld [vmem:[#allocation12 + $0x2] ss:$0 sm:$0xff]  ;;  %p955_p6 = scmp.ne.s32.totalorder %s648_s13, %s954_s14  ;;  %p960_p8 = scmp.lt.s32.totalorder %s954_s14, %s954_s14 }
  0x74   :  { %v448_v54 = vld [vmem:[#allocation11 + $0x48] sm:$0xff]  ;;  %v450_v55 = vld [vmem:[#allocation11 + $0x58] sm:$0xff]  ;;  %v447_v57 = vld [vmem:[#allocation11 + $0x40] sm:$0xff] }
  0x75   :  { %v759_v56 = vpack.c.bf16 %v450_v55, %v448_v54  ;;  %v449_v58 = vld [vmem:[#allocation11 + $0x50] sm:$0xff]  ;;  %v452_v60 = vld [vmem:[#allocation11 + $0x68] sm:$0xff]  ;;  %v454_v61 = vld [vmem:[#allocation11 + $0x78] sm:$0xff]  ;;  %p961_p9 = por %p960_p8, %p959_p7 }
  0x76   :  { %738 = vmatpush3.bf16.msra.mxu1 %v737_v7  ;;  %v761_v59 = vpack.c.bf16 %v449_v58, %v447_v57  ;;  %v763_v62 = vpack.c.bf16 %v454_v61, %v452_v60  ;;  %v451_v63 = vld [vmem:[#allocation11 + $0x60] sm:$0xff]  ;;  %v456_v3 = vld [vmem:[#allocation11 + $0x88] sm:$0xff]  ;;  %v458_v4 = vld [vmem:[#allocation11 + $0x98] sm:$0xff] }
  0x77   :  { %739 = vmatprep.subr.bf16.mxu1 %v1008_v0  ;;  %760 = vmatprep.subr.bf16.mxu0 %v759_v56  ;;  %v767_v5 = vpack.c.bf16 %v458_v4, %v456_v3  ;;  %v457_v6 = vld [vmem:[#allocation11 + $0x90] sm:$0xff]  ;;  %v462_v9 = vld [vmem:[#allocation11 + $0xb8] sm:$0xff]  ;;  %v463_v16 = vld [vmem:[#allocation11 + $0xc0] sm:$0xff]  ;;  %p962_p10 = pnand %p961_p9, %p955_p6 }
  0x78   :  { %762 = vmatpush1.bf16.msra.mxu0 %v761_v59  ;;  %v461_v12 = vld [vmem:[#allocation11 + $0xb0] sm:$0xff]  ;;  %v466_v15 = vld [vmem:[#allocation11 + $0xd8] sm:$0xff]  ;;  %v468_v19 = vld [vmem:[#allocation11 + $0xe8] sm:$0xff] }
  0x79   :  { %712 = vmatmul.mubr.msk.f32.vlgmr.msra.gmra.mrb[0].mxu1 %vm126_vm1, %v104_v8  ;;  %764 = vmatprep.subr.bf16.mxu0 %v763_v62  ;;  %v460_v8 = vld [vmem:[#allocation11 + $0xa8] sm:$0xff]  ;;  %v465_v18 = vld [vmem:[#allocation11 + $0xd0] sm:$0xff] }
  0x7a   :  { %730 = vmatprep.mubr.msk.f32.mxu1 %vm1009_vm0, %v1010_v1  ;;  %741 = vmatpush3.bf16.msra.mxu1 %v740_v11  ;;  %v771_v10 = vpack.c.bf16 %v462_v9, %v460_v8  ;;  %v459_v11 = vld [vmem:[#allocation11 + $0xa0] sm:$0xff] }
  0x7b   :  { %742 = vmatprep.subr.bf16.mxu1 %v1008_v0  ;;  %v773_v13 = vpack.c.bf16 %v461_v12, %v459_v11  ;;  %v682_v12 = vld [vmem:[#allocation12 + $0x4] ss:$0 sm:$0xff] }
  0x7e   :  { %744 = vmatpush3.bf16.msra.mxu1 %v743_v14  ;;  %v464_v14 = vld [vmem:[#allocation11 + $0xc8] sm:$0xff] }
  0x7f   :  { %745 = vmatprep.subr.bf16.mxu1 %v1008_v0 }
  0x82   :  { %747 = vmatpush3.bf16.msra.mxu1 %v746_v17  ;;  %v775_v17 = vpack.c.bf16 %v466_v15, %v464_v14  ;;  %v683_v14 = vld [vmem:[#allocation12 + $0x5] ss:$0 sm:$0xff] }
  0x83   :  { %748 = vmatprep.subr.bf16.mxu1 %v1008_v0  ;;  %v453_v0 = vld [vmem:[#allocation11 + $0x70] sm:$0xff] }
  0x84   :  { %v765_v2 = vpack.c.bf16 %v453_v0, %v451_v63 }
  0x86   :  { %750 = vmatpush3.bf16.msra.mxu1 %v749_v20  ;;  %766 = vmatpush1.bf16.msra.mxu0 %v765_v2  ;;  %v470_v20 = vld [vmem:[#allocation11 + $0xf8] sm:$0xff] }
  0x87   :  { %768 = vmatprep.subr.bf16.mxu0 %v767_v5 }
 0x14c   :  { %v196_v22 = vpop.f32.mrb[0].mxu1 }
 0x14d   :  { %v197_v23 = vadd.f32 %v676_v21, %v196_v22  ;;  %v713_v24 = vpop.f32.mrb[1].mxu1  ;;  %v777_v21 = vpack.c.bf16 %v465_v18, %v463_v16  ;;  %v779_v22 = vpack.c.bf16 %v470_v20, %v468_v19  ;;  %v685_v18 = vld [vmem:[#allocation12 + $0x6] ss:$0 sm:$0xff] }
 0x14e   :  { %v469_v24 = vld [vmem:[#allocation11 + $0xf0] sm:$0xff] }
 0x14f   :  { %v201_v25 = vsel %vm200_vm2, %v197_v23, 0.0  ;;  %v208_v26 = vmul.f32 %v197_v23, %v197_v23 }
 0x150   :  { %v202_v27 = vrot.slane %v201_v25, 4 }
 0x151   :  { %v209_v28 = vsel %vm200_vm2, %v208_v26, 0.0  ;;  %v368_v26 = vld [vmem:[#allocation11 + $0x18] sm:$0xff] }
 0x152   :  { %v203_v29 = vadd.f32 %v202_v27, %v201_v25  ;;  %v210_v30 = vrot.slane %v209_v28, 4  ;;  %v366_v25 = vld [vmem:[#allocation11 + $0x8] sm:$0xff]  ;;  %v365_v27 = vld [vmem:[#allocation11] sm:$0xff] }
 0x154   :  { %v204_v31 = vrot.slane %v203_v29, 2  ;;  %v211_v32 = vadd.f32 %v210_v30, %v209_v28  ;;  %v367_v28 = vld [vmem:[#allocation11 + $0x10] sm:$0xff]  ;;  %v751_v30 = vpack.c.bf16 %v368_v26, %v366_v25  ;;  %v686_v25 = vld [vmem:[#allocation12 + $0x7] ss:$0 sm:$0xff] }
 0x156   :  { %v205_v33 = vadd.f32 %v204_v31, %v203_v29  ;;  %v212_v34 = vrot.slane %v211_v32, 2  ;;  %v753_v31 = vpack.c.bf16 %v367_v28, %v365_v27  ;;  %752 = vmatprep.subr.bf16.mxu1 %v751_v30  ;;  %v687_v30 = vld [vmem:[#allocation12 + $0x8] ss:$0 sm:$0xff] }
 0x158   :  { %v206_v35 = vrot.slane %v205_v33, 1  ;;  %v213_v36 = vadd.f32 %v212_v34, %v211_v32  ;;  %v472_v32 = vld [vmem:[#allocation11 + $0x108] sm:$0xff]  ;;  %v471_v34 = vld [vmem:[#allocation11 + $0x100] sm:$0xff] }
 0x15a   :  { %v207_v37 = vadd.f32 %v206_v35, %v205_v33  ;;  %v214_v38 = vrot.slane %v213_v36, 1  ;;  %v474_v33 = vld [vmem:[#allocation11 + $0x118] sm:$0xff] }
 0x15b   :  { %v783_v35 = vpack.c.bf16 %v474_v33, %v472_v32 }
 0x15c   :  { %v215_v39 = vadd.f32 %v214_v38, %v213_v36  ;;  %v216_v40 = vmul.f32 0.125, %v207_v37  ;;  %v473_v36 = vld [vmem:[#allocation11 + $0x110] sm:$0xff]  ;;  %v370_v37 = vld [vmem:[#allocation11 + $0x28] sm:$0xff]  ;;  %v372_v38 = vld [vmem:[#allocation11 + $0x38] sm:$0xff] }
 0x15e   :  { %v217_v41 = vmul.f32 0.125, %v215_v39  ;;  %v218_v42 = vmul.f32 %v216_v40, %v216_v40  ;;  %v221_v46 = vsub.f32 %v197_v23, %v216_v40  ;;  %v467_v23 = vld [vmem:[#allocation11 + $0xe0] sm:$0xff]  ;;  %v755_v39 = vpack.c.bf16 %v372_v38, %v370_v37 }
 0x15f   :  { %v781_v29 = vpack.c.bf16 %v469_v24, %v467_v23  ;;  %v369_v40 = vld [vmem:[#allocation11 + $0x20] sm:$0xff] }
 0x160   :  { %v219_v43 = vsub.f32 %v217_v41, %v218_v42  ;;  %v371_v41 = vld [vmem:[#allocation11 + $0x30] sm:$0xff]  ;;  %v476_v42 = vld [vmem:[#allocation11 + $0x128] sm:$0xff] }
 0x162   :  { %v220_v44 = vmax.f32 %v219_v43, 0.0  ;;  %v757_v43 = vpack.c.bf16 %v371_v41, %v369_v40 }
 0x164   :  { %v222_v45 = vadd.f32 1e-05, %v220_v44  ;;  %v478_v44 = vld [vmem:[#allocation11 + $0x138] sm:$0xff] }
 0x166   :  { %814 = vrsqrt.f32 %v222_v45  ;;  %v785_v45 = vpack.c.bf16 %v473_v36, %v471_v34  ;;  %v688_v36 = vld [vmem:[#allocation12 + $0x9] ss:$0 sm:$0xff] }
 0x170   :  { %v815_v47 = vpop.eup %814 }
 0x171   :  { %v224_v49 = vmul.f32 %v815_v47, %v221_v46  ;;  %v787_v46 = vpack.c.bf16 %v478_v44, %v476_v42  ;;  %v475_v47 = vld [vmem:[#allocation11 + $0x120] sm:$0xff] }
 0x173   :  { %v231_v51 = vmul.f32 %v678_v48, %v224_v49  ;;  %v477_v48 = vld [vmem:[#allocation11 + $0x130] sm:$0xff]  ;;  %v105_v49 = vld [vmem:[#allocation6] sm:$0xff] }
 0x175   :  { %v238_v52 = vadd.f32 %v679_v50, %v231_v51  ;;  %v789_v50 = vpack.c.bf16 %v477_v48, %v475_v47  ;;  %v680_v51 = vld [vmem:[#allocation12 + $0x3] ss:$0 sm:$0xff] }
 0x177   :  { %v239_v53 = vmax.f32 %v238_v52, 0.0 }
 0x179   :  { %731 = vmatmul.mubr.msk.f32.vlgmr.msra.gmra.mrb[2].mxu1 %vm200_vm2, %v239_v53 }
 0x17a   :  { %440 = vmatprep.mubr.f32.mxu1 %v1010_v1  ;;  %v455_v1 = vld [vmem:[#allocation11 + $0x80] sm:$0xff]  ;;  %754 = vmatpush1.bf16.msra.mxu1 %v753_v31 }
 0x17b   :  { %v769_v7 = vpack.c.bf16 %v457_v6, %v455_v1  ;;  %756 = vmatprep.subr.bf16.mxu1 %v755_v39 }
 0x17d   :  { %770 = vmatpush1.bf16.msra.mxu0 %v769_v7 }
 0x17e   :  { %772 = vmatprep.subr.bf16.mxu0 %v771_v10  ;;  %758 = vmatpush1.bf16.msra.mxu1 %v757_v43 }
 0x181   :  { %774 = vmatpush1.bf16.msra.mxu0 %v773_v13  ;;  %684 = vmatmul.mubr.msk.f32.vlgmr.msra.gmra.mrb[4].mxu1 %vm126_vm1, %v105_v49 }
 0x182   :  { %776 = vmatprep.subr.bf16.mxu0 %v775_v17 }
 0x185   :  { %778 = vmatpush1.bf16.msra.mxu0 %v777_v21 }
 0x186   :  { %780 = vmatprep.subr.bf16.mxu0 %v779_v22 }
 0x189   :  { %782 = vmatpush1.bf16.msra.mxu0 %v781_v29 }
 0x18a   :  { %784 = vmatprep.subr.bf16.mxu0 %v783_v35 }
 0x18d   :  { %786 = vmatpush1.bf16.msra.mxu0 %v785_v45 }
 0x18e   :  { %788 = vmatprep.subr.bf16.mxu0 %v787_v46 }
 0x191   :  { %790 = vmatpush1.bf16.msra.mxu0 %v789_v50 }
 0x24c   :  { %v323_v52 = vpop.f32.mrb[2].mxu1 }
 0x24d   :  { %v324_v53 = vadd.f32 %v680_v51, %v323_v52  ;;  %v732_v54 = vpop.f32.mrb[3].mxu1 }
 0x24f   :  { %v327_v55 = vrot.slane %v324_v53, 4  ;;  %v333_v56 = vmul.f32 %v324_v53, %v324_v53 }
 0x251   :  { %v328_v57 = vadd.f32 %v327_v55, %v324_v53  ;;  %v334_v58 = vrot.slane %v333_v56, 4 }
 0x253   :  { %v329_v59 = vrot.slane %v328_v57, 2  ;;  %v335_v60 = vadd.f32 %v334_v58, %v333_v56 }
 0x254   :  { %v442_v19 = vpop.f32.mrb[4].mxu1 }
 0x255   :  { %v330_v61 = vadd.f32 %v329_v59, %v328_v57  ;;  %v336_v62 = vrot.slane %v335_v60, 2  ;;  %v557_v20 = vadd.f32 %v685_v18, %v442_v19  ;;  %v444_v21 = vpop.f32.mrb[5].mxu1 }
 0x257   :  { %v331_v63 = vrot.slane %v330_v61, 1  ;;  %v337_v0 = vadd.f32 %v336_v62, %v335_v60  ;;  %559 = vst [vmem:[%s1193_s7 + $0x8] sm:$0xff] %v557_v20 }
 0x259   :  { %v332_v2 = vadd.f32 %v331_v63, %v330_v61  ;;  %v338_v3 = vrot.slane %v337_v0, 1 }
 0x25b   :  { %v339_v4 = vadd.f32 %v338_v3, %v337_v0  ;;  %v340_v5 = vmul.f32 0.125, %v332_v2 }
 0x25d   :  { %v341_v1 = vmul.f32 0.125, %v339_v4  ;;  %v342_v6 = vmul.f32 %v340_v5, %v340_v5  ;;  %v345_v10 = vsub.f32 %v324_v53, %v340_v5 }
 0x25f   :  { %v343_v7 = vsub.f32 %v341_v1, %v342_v6 }
 0x261   :  { %v344_v8 = vmax.f32 %v343_v7, 0.0 }
 0x263   :  { %v346_v9 = vadd.f32 1e-05, %v344_v8 }
 0x265   :  { %816 = vrsqrt.f32 %v346_v9 }
 0x26f   :  { %v817_v11 = vpop.eup %816 }
 0x270   :  { %v348_v13 = vmul.f32 %v817_v11, %v345_v10 }
 0x272   :  { %v355_v15 = vmul.f32 %v682_v12, %v348_v13 }
 0x274   :  { %v362_v16 = vadd.f32 %v683_v14, %v355_v15 }
 0x276   :  { %v363_v17 = vmax.f32 %v362_v16, 0.0 }
 0x278   :  { %544 = vmatmul.mubr.f32.vlgmr.msra.gmra.mrb[0].mxu0 %v363_v17  ;;  %364 = vst [vmem:[#allocation14] sm:$0xff] %v363_v17 }
 0x34b   :  { %v545_v22 = vpop.f32.mrb[0].mxu0 }
 0x34c   :  { %v556_v23 = vadd.f32 %v685_v18, %v545_v22  ;;  %v547_v24 = vpop.f32.mrb[1].mxu0 }
 0x34d   :  { %v560_v26 = vrot.slane %v547_v24, 7  ;;  %v561_v27 = vadd.f32 %v547_v24, %v444_v21 }
 0x34e   :  { %558 = vst [vmem:[%s1193_s7] sm:$0xff] %v556_v23 }
 0x34f   :  { %v570_v28 = vadd.f32 %v560_v26, %v444_v21  ;;  %v568_v29 = vadd.f32 %v686_v25, %v561_v27 }
 0x351   :  { %v569_v31 = vmax.f32 %v568_v29, 0.0  ;;  %v571_v32 = vadd.f32 %v686_v25, %v570_v28 }
 0x353   :  { %v579_v33 = vmul.f32 %v687_v30, %v569_v31  ;;  %v572_v34 = vmax.f32 %v571_v32, 0.0 }
 0x355   :  { %580 = vadd.xlane.f32.xlu0 %v579_v33  ;;  %v589_v35 = vmul.f32 %v687_v30, %v572_v34 }
 0x359   :  { %590 = vadd.xlane.f32.xlu0 %v589_v35 }
 0x3e2   :  { %v581_v37 = vpop.xlane.xlu0 %580 }
 0x3e3   :  { %v588_v38 = vadd.f32 %v688_v36, %v581_v37 }
 0x3e5   :  { %v594_v39 = vsel %vm593_vm3, %v588_v38, 0.0 }
 0x3e6   :  { %595 = vadd.xlane.f32.xlu1 %v594_v39  ;;  %v591_v40 = vpop.xlane.xlu0 %590 }
 0x3e7   :  { %v592_v41 = vadd.f32 %v688_v36, %v591_v40 }
 0x3e9   :  { %v606_v42 = vsel %vm593_vm3, %v592_v41, -inf }
 0x3ea   :  { %607 = vmax.xlane.f32.xlu1 %v606_v42 }
 0x473   :  { %v596_v43 = vpop.xlane.xlu1 %595 }
 0x474   :  { %v597_v44 = vrot.slane %v596_v43, 4 }
 0x476   :  { %v598_v45 = vadd.f32 %v597_v44, %v596_v43 }
 0x477   :  { %v608_v46 = vpop.xlane.xlu1 %607 }
 0x478   :  { %v599_v47 = vrot.slane %v598_v45, 2  ;;  %v609_v48 = vrot.slane %v608_v46, 4 }
 0x47a   :  { %v610_v49 = vmax.f32 %v608_v46, %v609_v48  ;;  %v600_v50 = vadd.f32 %v599_v47, %v598_v45 }
 0x47c   :  { %v611_v51 = vrot.slane %v610_v49, 2  ;;  %v601_v52 = vrot.slane %v600_v50, 1 }
 0x47e   :  { %v612_v53 = vmax.f32 %v610_v49, %v611_v51  ;;  %v602_v54 = vadd.f32 %v601_v52, %v600_v50 }
 0x480   :  { %791 = vpush %v602_v54  ;;  %v613_v55 = vrot.slane %v612_v53, 1 }
 0x482   :  { %v614_v56 = vmax.f32 %v612_v53, %v613_v55 }
 0x484   :  { %793 = vpush %v614_v56 }
 0x4b1   :  { %s1155_s7 = spop %791 }
 0x4b5   :  { %s1157_s11 = spop %793 }
 0x4b6   :  { %v616_v57 = vstv %s1157_s11 }
 0x4b7   :  { %v617_v58 = vsub.f32 %v592_v41, %v616_v57 }
 0x4b9   :  { %v618_v59 = vmul.f32 1.442695, %v617_v58 }
 0x4bb   :  { %818 = vpow2.f32 %v618_v59 }
 0x4c5   :  { %v819_v60 = vpop.eup %818 }
 0x4c6   :  { %v620_v61 = vsel %vm593_vm3, %v819_v60, 0.0 }
 0x4c7   :  { %621 = vadd.xlane.f32.xlu0 %v620_v61 }
 0x554   :  { %v622_v62 = vpop.xlane.xlu0 %621 }
 0x555   :  { %v623_v63 = vrot.slane %v622_v62, 4 }
 0x557   :  { %v624_v0 = vadd.f32 %v623_v63, %v622_v62 }
 0x559   :  { %v625_v2 = vrot.slane %v624_v0, 2 }
 0x55b   :  { %v626_v3 = vadd.f32 %v625_v2, %v624_v0 }
 0x55c   :  { %965 = shalt.err (!%p962_p10)
}
 0x55d   :  { %s966_s17 = scalar_lea.hbm %s1192_s6, 128 }
 0x55e   :  { %p967_p11 = scmp.ne.s32.totalorder %s1192_s6, %s966_s17  ;;  %p970_p12 = scmp.lt.u32.totalorder %s966_s17, %s1192_s6 }
 0x560   :  { %p972_p13 = pnand %p970_p12, %p967_p11 }
 0x562   :  { %975 = shalt.err (!%p972_p13)
}
 0x563   :  { %650 = dma.vmem_to_hbm [thread:$0]  %s648_s13, 128, %s1192_s6, [#allocation4]   ;;  %v627_v4 = vrot.slane %v626_v3, 1  ;;  %v604_v8 = vstv %s1155_s7 }
 0x564   :  { %v605_v10 = vmul.f32 0.125, %v604_v8  ;;  %s976_s6 = scalar_lea.hbm %s1194_s8, 16 }
 0x565   :  { %v628_v5 = vadd.f32 %v627_v4, %v626_v3  ;;  %p977_p0 = scmp.ne.s32.totalorder %s1194_s8, %s976_s6  ;;  %p980_p1 = scmp.lt.u32.totalorder %s976_s6, %s1194_s8 }
 0x567   :  { %795 = vpush %v628_v5  ;;  %p982_p2 = pnand %p980_p1, %p977_p0 }
 0x598   :  { %s796_s21 = spop %795 }
 0x599   :  { %v630_v1 = vstv %s796_s21 }
 0x59a   :  { %v631_v6 = vmul.f32 0.125, %v630_v1 }
 0x59c   :  { %820 = vlog2.f32 %v631_v6 }
 0x5a6   :  { %v821_v7 = vpop.eup %820 }
 0x5a7   :  { %v633_v9 = vmul.f32 0.6931472, %v821_v7 }
 0x5a9   :  { %v634_v11 = vadd.f32 %v633_v9, %v616_v57 }
 0x5ab   :  { %v635_v12 = vsub.f32 %v605_v10, %v634_v11 }
 0x5ad   :  { %v636_v13 = vsub.f32 0.0, %v635_v12 }
 0x5af   :  { %797 = vpush %v636_v13 }
 0x5e0   :  { %s798_s22 = spop %797 }
 0x5e1   :  { %640 = sst [smem:[#allocation15]] %s798_s22 }
 0x5e2   :  { %985 = shalt.err (!%p982_p2)
}
 0x5e3   :  { %s1012_s9 = smov [#allocation15]  }
 0x5e4   :  { %660 = dma.smem_to_hbm %s1012_s9, 16, %s1194_s8, [#allocation5]  }
 0x5e5   :  { %994 = dma.done.wait [#allocation4], 128  }
 0x5e6   :  { %995 = vsyncadd [#allocation4], 4294967168 }
 0x5e7   :  { %996 = dma.done.wait [#allocation5], 16  }
 0x5e8   :  { %997 = vsyncadd [#allocation5], 4294967280 }
 0x5e9   :  { %669 = sfence }
 0x5ea   :  { %670 = vsyncpa [#allocation3], 1 }
 0x5eb   :  { %671 = vsyncpa [#allocation7], 1 }
 0x5ec   :  { %672 = vsyncpa [#allocation10], 1 }
 0x5ed   :  { %673 = vsyncpa [#allocation13], 1 }
 0x5ee   :  { %674 = vsyncpa [#allocation4], 1 }
 0x5ef   :  { %675 = vsyncpa [#allocation5], 1 }

</bundles_post_ra>
